<compile_context>
chip_gen: v6e
topology: v6e:2x2x1
jax: 0.10.0
libtpu: 0.0.40
codegen_flags: <defaults>
</compile_context>

<pallas_src>
import jax
import jax.numpy as jnp
from jax.experimental import pallas as pl
from jax.experimental.pallas import tpu as pltpu

# Module hyper-parameters (from the PyTorch script)
INPUT_SIZE = 512     # MAX_SEQ_LENGTH
HIDDEN_SIZE = 256
OUTPUT_SIZE = 3
BATCH = 8            # small demo batch

O_PAD = 128          # lane-dense padded fc2 output width


def mlp_kernel(x_ref, w1_ref, b1_ref, w2_ref, b2_ref, o_ref):
    # x arrives as f32; cast to bf16 in-kernel (hides under the MXU work,
    # avoids a separate wrapper-side pad/cast pass over HBM).
    x = x_ref[...].astype(jnp.bfloat16)
    # fc1: [tm, F](bf16) @ [F, H](bf16) -> f32 accumulation on the MXU.
    h = jnp.dot(x, w1_ref[...], preferred_element_type=jnp.float32)
    # bias + ReLU in f32 (v5e-friendly elementwise path).
    h = jnp.maximum(h + b1_ref[...], 0.0)
    # fc2: [tm, H](bf16) @ [H, O_PAD](bf16) -> f32; O_PAD=128 keeps the output
    # lane-dense so the store is an unmasked vst.
    out = jnp.dot(h.astype(jnp.bfloat16), w2_ref[...],
                  preferred_element_type=jnp.float32)
    o_ref[...] = (out + b2_ref[...]).astype(o_ref.dtype)


def prepare_params(w1, b1, w2, b2):
    """One-time parameter prep (do NOT redo per forward call).

    w1: [F, H] f32  -> bf16
    b1: [1, H] f32  -> f32 (unchanged)
    w2: [H, O] f32  -> [H, O_PAD] bf16 (zero-padded lanes)
    b2: [1, O] f32  -> [1, O_PAD] f32  (zero-padded lanes)
    """
    out_size = w2.shape[1]
    w1_b = w1.astype(jnp.bfloat16)
    w2_p = jnp.pad(w2, ((0, 0), (0, O_PAD - out_size))).astype(jnp.bfloat16)
    b2_p = jnp.pad(b2, ((0, 0), (0, O_PAD - out_size))).astype(jnp.float32)
    return (w1_b, b1.astype(jnp.float32), w2_p, b2_p, out_size)


def _pick_tm(batch):
    """Batch tile: sized to the real batch when small, MXU-sized when large."""
    if batch <= 128:
        # Single tile, minimal (8-row f32 sublane granularity) padding.
        return 8 * pl.cdiv(batch, 8)
    # Large batch: 256-row tiles fill the 2x256x256 MXU on v6e/v7x and give
    # multiple "parallel" grid steps for v7x's 2 TensorCores; v5e (4x128x128
    # MXU) prefers 128.
    big = 256
    try:
        if "v5" in jax.devices()[0].device_kind.lower():
            big = 128
    except Exception:
        pass
    return min(big, 8 * pl.cdiv(batch, 8))


def mlp_forward(x, prepared, *, tm=None):
    """Fused MLP forward.

    x:        [B, F] float32
    prepared: output of prepare_params (bf16 weights, padded fc2 weight/bias)
    Returns [B, O] float32.
    """
    w1_b, b1, w2_p, b2_p, out_size = prepared
    B, F = x.shape
    H = w1_b.shape[1]

    if tm is None:
        tm = _pick_tm(B)
    num_tiles = pl.cdiv(B, tm)
    Bp = num_tiles * tm
    # Skip the pad pass entirely when B already matches the tiling.
    x_p = x if Bp == B else jnp.pad(x, ((0, Bp - B), (0, 0)))

    out_p = pl.pallas_call(
        mlp_kernel,
        out_shape=jax.ShapeDtypeStruct((Bp, O_PAD), jnp.float32),
        grid_spec=pltpu.PrefetchScalarGridSpec(
            num_scalar_prefetch=0,
            grid=(num_tiles,),
            in_specs=[
                # x: tiled over the batch axis (f32 in HBM, cast in-kernel).
                pl.BlockSpec((tm, F), lambda i: (i, 0)),
                # weights / biases: resident across all grid steps.
                pl.BlockSpec((F, H), lambda i: (0, 0)),
                pl.BlockSpec((1, H), lambda i: (0, 0)),
                pl.BlockSpec((H, O_PAD), lambda i: (0, 0)),
                pl.BlockSpec((1, O_PAD), lambda i: (0, 0)),
            ],
            out_specs=pl.BlockSpec((tm, O_PAD), lambda i: (i, 0)),
        ),
        compiler_params=pltpu.CompilerParams(
            # Batch tiles are independent; with >=2 tiles (large B) this lets
            # v7x shard them across its 2 TensorCores.
            dimension_semantics=("parallel",),
            vmem_limit_bytes=32 * 1024 * 1024,
        ),
    )(x_p, w1_b, b1, w2_p, b2_p)

    # Padded rows/lanes (if any) are sliced away here; nothing downstream may
    # reduce over out_p before this slice.
    return out_p[:B, :out_size]


def init_params(key):
    """Deterministic synthetic parameters matching nn.Linear shapes.

    PyTorch stores fc1.weight as [H, F]; we store the transpose [F, H]
    so the kernel computes x @ W1 + b1 == x @ fc1.weight.T + fc1.bias.
    """
    k1, k2, k3, k4 = jax.random.split(key, 4)
    bound1 = 1.0 / (INPUT_SIZE ** 0.5)
    bound2 = 1.0 / (HIDDEN_SIZE ** 0.5)
    w1 = jax.random.uniform(k1, (INPUT_SIZE, HIDDEN_SIZE),
                            jnp.float32, -bound1, bound1)
    b1 = jax.random.uniform(k2, (1, HIDDEN_SIZE), jnp.float32, -bound1, bound1)
    w2 = jax.random.uniform(k3, (HIDDEN_SIZE, OUTPUT_SIZE),
                            jnp.float32, -bound2, bound2)
    b2 = jax.random.uniform(k4, (1, OUTPUT_SIZE), jnp.float32, -bound2, bound2)
    return w1, b1, w2, b2


if __name__ == "__main__":
    key = jax.random.PRNGKey(0)
    kx, kp = jax.random.split(key)
    x = jax.random.normal(kx, (BATCH, INPUT_SIZE), jnp.float32)
    w1, b1, w2, b2 = init_params(kp)

    # Weight prep happens once, outside the per-call path.
    prepared = prepare_params(w1, b1, w2, b2)

    out = mlp_forward(x, prepared)
    out = jax.block_until_ready(out)
    assert out.shape == (BATCH, OUTPUT_SIZE)

    # Reference with the same bf16-operand / f32-accumulate numerics.
    h_ref = jnp.maximum(
        jnp.dot(x.astype(jnp.bfloat16), w1.astype(jnp.bfloat16),
                preferred_element_type=jnp.float32) + b1, 0.0)
    ref = jnp.dot(h_ref.astype(jnp.bfloat16), w2.astype(jnp.bfloat16),
                  preferred_element_type=jnp.float32) + b2
    assert jnp.allclose(out, ref, atol=2e-2, rtol=2e-2)

    # Loose sanity check vs. full-f32 math (bf16 operand cast error only).
    # TODO(synk): exact f32 parity with the PyTorch module would require f32
    # (multi-pass) MXU matmuls; bf16 operands + f32 accumulation is the
    # standard TPU trade-off and is what the tolerances below reflect.
    ref_f32 = jnp.maximum(x @ w1 + b1, 0.0) @ w2 + b2
    assert jnp.allclose(out, ref_f32, atol=5e-2, rtol=5e-2)

    print("KERNEL_OK")
</pallas_src>

<mosaic_0001>
module attributes {stable_mosaic.version = 11 : i64} {
  func.func @mlp_kernel(%arg0: i32, %arg1: memref<8x512xf32, #tpu.memory_space<vmem>>, %arg2: memref<512x256xbf16, #tpu.memory_space<vmem>>, %arg3: memref<1x256xf32, #tpu.memory_space<vmem>>, %arg4: memref<256x128xbf16, #tpu.memory_space<vmem>>, %arg5: memref<1x128xf32, #tpu.memory_space<vmem>>, %arg6: memref<8x128xf32, #tpu.memory_space<vmem>>) attributes {dimension_semantics = [#tpu.dimension_semantics<parallel>], iteration_bounds = array<i64: 1>, scalar_prefetch = 0 : i64, scratch_operands = 0 : i64, tpu.core_type = #tpu.core_type<tc>, window_params = [{transform_indices = @transform_0, window_bounds = array<i64: 8, 512>}, {pipeline_mode = #tpu.pipeline_mode<synchronous>, transform_indices = @transform_1, window_bounds = array<i64: 512, 256>}, {pipeline_mode = #tpu.pipeline_mode<synchronous>, transform_indices = @transform_2, window_bounds = array<i64: 1, 256>}, {pipeline_mode = #tpu.pipeline_mode<synchronous>, transform_indices = @transform_3, window_bounds = array<i64: 256, 128>}, {pipeline_mode = #tpu.pipeline_mode<synchronous>, transform_indices = @transform_4, window_bounds = array<i64: 1, 128>}, {transform_indices = @transform_5, window_bounds = array<i64: 8, 128>}]} {
    %c0 = arith.constant 0 : index
    %c0_0 = arith.constant 0 : index
    %0 = vector.load %arg1[%c0, %c0_0] : memref<8x512xf32, #tpu.memory_space<vmem>>, vector<8x512xf32>
    %1 = arith.truncf %0 : vector<8x512xf32> to vector<8x512xbf16>
    %c0_1 = arith.constant 0 : index
    %c0_2 = arith.constant 0 : index
    %2 = vector.load %arg2[%c0_1, %c0_2] : memref<512x256xbf16, #tpu.memory_space<vmem>>, vector<512x256xbf16>
    %cst = arith.constant dense<0.000000e+00> : vector<8x256xf32>
    %3 = tpu.matmul %1, %2, %cst {dimension_numbers = #tpu.dot_dimension_numbers<[1], [0], [0], [1], [0, 0, 1, 1], [], []>} : vector<8x512xbf16>, vector<512x256xbf16>, vector<8x256xf32> -> vector<8x256xf32>
    %c0_3 = arith.constant 0 : index
    %c0_4 = arith.constant 0 : index
    %4 = vector.load %arg3[%c0_3, %c0_4] : memref<1x256xf32, #tpu.memory_space<vmem>>, vector<1x256xf32>
    %5 = vector.broadcast %4 : vector<1x256xf32> to vector<8x256xf32>
    %6 = arith.addf %3, %5 : vector<8x256xf32>
    %cst_5 = arith.constant 0.000000e+00 : f32
    %7 = vector.broadcast %cst_5 : f32 to vector<8x256xf32>
    %8 = arith.maximumf %6, %7 : vector<8x256xf32>
    %9 = arith.truncf %8 : vector<8x256xf32> to vector<8x256xbf16>
    %c0_6 = arith.constant 0 : index
    %c0_7 = arith.constant 0 : index
    %10 = vector.load %arg4[%c0_6, %c0_7] : memref<256x128xbf16, #tpu.memory_space<vmem>>, vector<256x128xbf16>
    %cst_8 = arith.constant dense<0.000000e+00> : vector<8x128xf32>
    %11 = tpu.matmul %9, %10, %cst_8 {dimension_numbers = #tpu.dot_dimension_numbers<[1], [0], [0], [1], [0, 0, 1, 1], [], []>} : vector<8x256xbf16>, vector<256x128xbf16>, vector<8x128xf32> -> vector<8x128xf32>
    %c0_9 = arith.constant 0 : index
    %c0_10 = arith.constant 0 : index
    %12 = vector.load %arg5[%c0_9, %c0_10] : memref<1x128xf32, #tpu.memory_space<vmem>>, vector<1x128xf32>
    %13 = vector.broadcast %12 : vector<1x128xf32> to vector<8x128xf32>
    %14 = arith.addf %11, %13 : vector<8x128xf32>
    %c0_11 = arith.constant 0 : index
    %c0_12 = arith.constant 0 : index
    %15 = vector.load %arg6[%c0_11, %c0_12] : memref<8x128xf32, #tpu.memory_space<vmem>>, vector<8x128xf32>
    tpu.vector_store %arg6[%c0_11, %c0_12], %14 {strides = array<i32>} : memref<8x128xf32, #tpu.memory_space<vmem>>, vector<8x128xf32>,
    return
  }
  func.func @transform_0(%arg0: i32) -> (i32, i32) {
    %c0_i32 = arith.constant 0 : i32
    %c0_i32_0 = arith.constant 0 : i32
    return %arg0, %c0_i32 : i32, i32
  }
  func.func @transform_1(%arg0: i32) -> (i32, i32) {
    %c0_i32 = arith.constant 0 : i32
    %c0_i32_0 = arith.constant 0 : i32
    %c0_i32_1 = arith.constant 0 : i32
    return %c0_i32, %c0_i32_0 : i32, i32
  }
  func.func @transform_2(%arg0: i32) -> (i32, i32) {
    %c0_i32 = arith.constant 0 : i32
    %c0_i32_0 = arith.constant 0 : i32
    %c0_i32_1 = arith.constant 0 : i32
    return %c0_i32, %c0_i32_0 : i32, i32
  }
  func.func @transform_3(%arg0: i32) -> (i32, i32) {
    %c0_i32 = arith.constant 0 : i32
    %c0_i32_0 = arith.constant 0 : i32
    %c0_i32_1 = arith.constant 0 : i32
    return %c0_i32, %c0_i32_0 : i32, i32
  }
  func.func @transform_4(%arg0: i32) -> (i32, i32) {
    %c0_i32 = arith.constant 0 : i32
    %c0_i32_0 = arith.constant 0 : i32
    %c0_i32_1 = arith.constant 0 : i32
    return %c0_i32, %c0_i32_0 : i32, i32
  }
  func.func @transform_5(%arg0: i32) -> (i32, i32) {
    %c0_i32 = arith.constant 0 : i32
    %c0_i32_0 = arith.constant 0 : i32
    return %arg0, %c0_i32 : i32, i32
  }
}

</mosaic_0001>

<bundles_post_ra>
// kernel: tpu_custom_call.1
= control target key start
LH: loop header
LB: loop body
LE: loop exit
PB: predicated region body
PF: predicated region fallthrough
CT: control target
= control target key end

     0   :  { %10 = vsyncpa [#allocation3], 0  ;;  %s1108_s0 = inlined_call_operand.hbm [shape: f32[8,512], index: 0, kind: input, shape index: {}]   ;;  %s1109_s1 = inlined_call_operand.hbm [shape: bf16[512,256], index: 1, kind: input, shape index: {}]   ;;  %s1110_s2 = inlined_call_operand.vmem [shape: f32[1,256], index: 2, kind: input, shape index: {}]   ;;  %s1111_s3 = inlined_call_operand.hbm [shape: bf16[256,128], index: 3, kind: input, shape index: {}]   ;;  %s1112_s4 = inlined_call_operand.vmem [shape: f32[1,128], index: 4, kind: input, shape index: {}]   ;;  %s1113_s5 = inlined_call_operand.hbm [shape: f32[8,128], index: 5, kind: output, shape index: {}]  }
   0x1   :  { %11 = vsyncpa [#allocation6], 0 }
   0x2   :  { %12 = vsyncpa [#allocation4], 0  ;;  %s1052_s18 = smov [#allocation5]  }
   0x3   :  { %s28_s19 = sshll.u32 %s1052_s18, 4  ;;  %s29_s19 = int_to_ptr.vmem [resolvable:$true] %s28_s19 }
   0x4   :  { %s974_s20 = scalar_lea.vmem %s29_s19, 8192  ;;  %p979_p1 = scmp.lt.s32.totalorder %s29_s19, %s29_s19 }
   0x5   :  { %p975_p0 = scmp.ne.s32.totalorder %s29_s19, %s974_s20  ;;  %p980_p2 = scmp.lt.s32.totalorder %s974_s20, %s974_s20 }
   0x7   :  { %p981_p3 = por %p980_p2, %p979_p1 }
   0x9   :  { %p982_p4 = pnand %p981_p3, %p975_p0 }
   0xb   :  { %985 = shalt.err (!%p982_p4)
}
   0xc   :  { %s1053_s21 = smov 128   ;;  %s1054_s22 = smov 8  }
   0xd   :  { %34 = dma.hbm_to_vmem [thread:$0]  %s1109_s1, 8192, %s29_s19, [#allocation6], %s1053_s21, %s1053_s21, %s1054_s22  }
   0xe   :  { %s1055_s25 = smov [#allocation2]   ;;  %s1056_s27 = smov [#allocation7]  }
   0xf   :  { %s19_s26 = sshll.u32 %s1055_s25, 4  ;;  %s42_s28 = sshll.u32 %s1056_s27, 4  ;;  %s20_s26 = int_to_ptr.vmem [resolvable:$true] %s19_s26  ;;  %s43_s28 = int_to_ptr.vmem [resolvable:$true] %s42_s28 }
  0x10   :  { %s994_s29 = scalar_lea.vmem %s20_s26, 512  ;;  %p999_p6 = scmp.lt.s32.totalorder %s20_s26, %s20_s26 }
  0x11   :  { %p995_p5 = scmp.ne.s32.totalorder %s20_s26, %s994_s29  ;;  %p1000_p7 = scmp.lt.s32.totalorder %s994_s29, %s994_s29 }
  0x13   :  { %p1001_p8 = por %p1000_p7, %p999_p6 }
  0x15   :  { %p1002_p9 = pnand %p1001_p8, %p995_p5 }
  0x17   :  { %1005 = shalt.err (!%p1002_p9)
}
  0x18   :  { %22 = dma.hbm_to_vmem [thread:$0]  %s1108_s0, 512, %s20_s26, [#allocation3]  }
  0x19   :  { %s1014_s7 = scalar_lea.vmem %s43_s28, 2048  ;;  %p1019_p11 = scmp.lt.s32.totalorder %s43_s28, %s43_s28 }
  0x1a   :  { %p1015_p10 = scmp.ne.s32.totalorder %s43_s28, %s1014_s7  ;;  %p1020_p12 = scmp.lt.s32.totalorder %s1014_s7, %s1014_s7 }
  0x1c   :  { %p1021_p13 = por %p1020_p12, %p1019_p11 }
  0x1e   :  { %p1022_p0 = pnand %p1021_p13, %p1015_p10 }
  0x20   :  { %1025 = shalt.err (!%p1022_p0)
}
  0x21   :  { %s1057_s1 = smov 64   ;;  %s1058_s8 = smov 4  }
  0x22   :  { %48 = dma.hbm_to_vmem [thread:$0]  %s1111_s3, 2048, %s43_s28, [#allocation6], %s1057_s1, %s1057_s1, %s1058_s8  }
  0x23   :  { %1046 = dma.done.wait [#allocation3], 512  }
  0x24   :  { %1047 = vsyncadd [#allocation3], 4294966784 }
  0x25   :  { %1048 = dma.done.wait [#allocation6], 10240  }
  0x26   :  { %1049 = vsyncadd [#allocation6], 4294957056  ;;  %v854_v0 = vld [vmem:[#allocation5 + $0x74] ss:$8 sps:$4 sm:$0xff]   ;;  %v858_v2 = vld [vmem:[#allocation5 + $0x70] ss:$8 sps:$4 sm:$0xff]  }
  0x27   :  { %v856_v1 = vld [vmem:[#allocation5 + $0x174] ss:$8 sps:$4 sm:$0xff]   ;;  %465 = vmatprep.subr.bf16.mxu0 %v854_v0  ;;  %v859_v3 = vld [vmem:[#allocation5 + $0x170] ss:$8 sps:$4 sm:$0xff]   ;;  %v860_v4 = vld [vmem:[#allocation5 + $0x64] ss:$8 sps:$4 sm:$0xff]  }
  0x28   :  { %506 = vmatprep.subr.bf16.mxu1 %v856_v1  ;;  %466 = vmatpush1.bf16.msra.mxu0 %v858_v2  ;;  %v862_v5 = vld [vmem:[#allocation5 + $0x164] ss:$8 sps:$4 sm:$0xff]   ;;  %v864_v6 = vld [vmem:[#allocation5 + $0x60] ss:$8 sps:$4 sm:$0xff]   ;;  %v866_v8 = vld [vmem:[#allocation5 + $0x54] ss:$8 sps:$4 sm:$0xff]  }
  0x29   :  { %507 = vmatpush1.bf16.msra.mxu1 %v859_v3  ;;  %467 = vmatprep.subr.bf16.mxu0 %v860_v4  ;;  %v865_v7 = vld [vmem:[#allocation5 + $0x160] ss:$8 sps:$4 sm:$0xff]   ;;  %v868_v9 = vld [vmem:[#allocation5 + $0x154] ss:$8 sps:$4 sm:$0xff]   ;;  %v870_v10 = vld [vmem:[#allocation5 + $0x50] ss:$8 sps:$4 sm:$0xff]  }
  0x2a   :  { %508 = vmatprep.subr.bf16.mxu1 %v862_v5  ;;  %v871_v11 = vld [vmem:[#allocation5 + $0x150] ss:$8 sps:$4 sm:$0xff]   ;;  %v872_v12 = vld [vmem:[#allocation5 + $0x44] ss:$8 sps:$4 sm:$0xff]   ;;  %v876_v14 = vld [vmem:[#allocation5 + $0x40] ss:$8 sps:$4 sm:$0xff]  }
  0x2b   :  { %v874_v13 = vld [vmem:[#allocation5 + $0x144] ss:$8 sps:$4 sm:$0xff]   ;;  %v877_v15 = vld [vmem:[#allocation5 + $0x140] ss:$8 sps:$4 sm:$0xff]   ;;  %v878_v16 = vld [vmem:[#allocation5 + $0x34] ss:$8 sps:$4 sm:$0xff]  }
  0x2c   :  { %468 = vmatpush1.bf16.msra.mxu0 %v864_v6  ;;  %v880_v17 = vld [vmem:[#allocation5 + $0x134] ss:$8 sps:$4 sm:$0xff]   ;;  %v882_v18 = vld [vmem:[#allocation5 + $0x30] ss:$8 sps:$4 sm:$0xff]   ;;  %v884_v20 = vld [vmem:[#allocation5 + $0x24] ss:$8 sps:$4 sm:$0xff]  }
  0x2d   :  { %509 = vmatpush1.bf16.msra.mxu1 %v865_v7  ;;  %469 = vmatprep.subr.bf16.mxu0 %v866_v8  ;;  %v883_v19 = vld [vmem:[#allocation5 + $0x130] ss:$8 sps:$4 sm:$0xff]   ;;  %v886_v21 = vld [vmem:[#allocation5 + $0x124] ss:$8 sps:$4 sm:$0xff]   ;;  %v888_v22 = vld [vmem:[#allocation5 + $0x20] ss:$8 sps:$4 sm:$0xff]  }
  0x2e   :  { %510 = vmatprep.subr.bf16.mxu1 %v868_v9  ;;  %v889_v23 = vld [vmem:[#allocation5 + $0x120] ss:$8 sps:$4 sm:$0xff]   ;;  %v890_v24 = vld [vmem:[#allocation5 + $0x14] ss:$8 sps:$4 sm:$0xff]   ;;  %v894_v26 = vld [vmem:[#allocation5 + $0x10] ss:$8 sps:$4 sm:$0xff]  }
  0x2f   :  { %v892_v25 = vld [vmem:[#allocation5 + $0x114] ss:$8 sps:$4 sm:$0xff]   ;;  %v895_v27 = vld [vmem:[#allocation5 + $0x110] ss:$8 sps:$4 sm:$0xff]   ;;  %v896_v28 = vld [vmem:[#allocation5 + $0x4] ss:$8 sps:$4 sm:$0xff]  }
  0x30   :  { %470 = vmatpush1.bf16.msra.mxu0 %v870_v10  ;;  %v898_v29 = vld [vmem:[#allocation5 + $0x104] ss:$8 sps:$4 sm:$0xff]   ;;  %v900_v30 = vld [vmem:[#allocation5] ss:$8 sps:$4 sm:$0xff]   ;;  %v902_v32 = vld [vmem:[#allocation5 + $0xf4] ss:$8 sps:$4 sm:$0xff]  }
  0x31   :  { %511 = vmatpush1.bf16.msra.mxu1 %v871_v11  ;;  %471 = vmatprep.subr.bf16.mxu0 %v872_v12  ;;  %v901_v31 = vld [vmem:[#allocation5 + $0x100] ss:$8 sps:$4 sm:$0xff]   ;;  %v904_v33 = vld [vmem:[#allocation5 + $0x1f4] ss:$8 sps:$4 sm:$0xff]   ;;  %v906_v34 = vld [vmem:[#allocation5 + $0xf0] ss:$8 sps:$4 sm:$0xff]  }
  0x32   :  { %512 = vmatprep.subr.bf16.mxu1 %v874_v13  ;;  %v907_v35 = vld [vmem:[#allocation5 + $0x1f0] ss:$8 sps:$4 sm:$0xff]   ;;  %v908_v36 = vld [vmem:[#allocation5 + $0xe4] ss:$8 sps:$4 sm:$0xff]   ;;  %v912_v38 = vld [vmem:[#allocation5 + $0xe0] ss:$8 sps:$4 sm:$0xff]  }
  0x33   :  { %v910_v37 = vld [vmem:[#allocation5 + $0x1e4] ss:$8 sps:$4 sm:$0xff]   ;;  %v913_v39 = vld [vmem:[#allocation5 + $0x1e0] ss:$8 sps:$4 sm:$0xff]   ;;  %v914_v40 = vld [vmem:[#allocation5 + $0xd4] ss:$8 sps:$4 sm:$0xff]  }
  0x34   :  { %472 = vmatpush1.bf16.msra.mxu0 %v876_v14  ;;  %v916_v41 = vld [vmem:[#allocation5 + $0x1d4] ss:$8 sps:$4 sm:$0xff]   ;;  %v918_v42 = vld [vmem:[#allocation5 + $0xd0] ss:$8 sps:$4 sm:$0xff]   ;;  %v920_v44 = vld [vmem:[#allocation5 + $0xc4] ss:$8 sps:$4 sm:$0xff]  }
  0x35   :  { %513 = vmatpush1.bf16.msra.mxu1 %v877_v15  ;;  %473 = vmatprep.subr.bf16.mxu0 %v878_v16  ;;  %v919_v43 = vld [vmem:[#allocation5 + $0x1d0] ss:$8 sps:$4 sm:$0xff]   ;;  %v922_v45 = vld [vmem:[#allocation5 + $0x1c4] ss:$8 sps:$4 sm:$0xff]   ;;  %v924_v47 = vld [vmem:[#allocation5 + $0xc0] ss:$8 sps:$4 sm:$0xff]  }
  0x36   :  { %514 = vmatprep.subr.bf16.mxu1 %v880_v17  ;;  %v62_v46 = vld [vmem:[#allocation2 + $0x8] sm:$0xff]  ;;  %v64_v50 = vld [vmem:[#allocation2 + $0x18] sm:$0xff]  ;;  %v61_v4 = vld [vmem:[#allocation2] sm:$0xff]  ;;  %s1059_s12 = smov [#allocation8]  }
  0x37   :  { %v925_v48 = vld [vmem:[#allocation5 + $0x1c0] ss:$8 sps:$4 sm:$0xff]   ;;  %v66_v49 = vpack.c.bf16 %v62_v46, %v62_v46  ;;  %v926_v51 = vld [vmem:[#allocation5 + $0xb4] ss:$8 sps:$4 sm:$0xff]   ;;  %v68_v52 = vpack.c.bf16 %v64_v50, %v64_v50  ;;  %v930_v54 = vld [vmem:[#allocation5 + $0xb0] ss:$8 sps:$4 sm:$0xff]   ;;  %v65_v7 = vpack.c.bf16 %v61_v4, %v61_v4 }
  0x38   :  { %474 = vmatpush1.bf16.msra.mxu0 %v882_v18  ;;  %v928_v53 = vld [vmem:[#allocation5 + $0x1b4] ss:$8 sps:$4 sm:$0xff]   ;;  %v931_v55 = vld [vmem:[#allocation5 + $0x1b0] ss:$8 sps:$4 sm:$0xff]   ;;  %v932_v56 = vld [vmem:[#allocation5 + $0xa4] ss:$8 sps:$4 sm:$0xff]  }
  0x39   :  { %515 = vmatpush1.bf16.msra.mxu1 %v883_v19  ;;  %475 = vmatprep.subr.bf16.mxu0 %v884_v20  ;;  %v934_v57 = vld [vmem:[#allocation5 + $0x1a4] ss:$8 sps:$4 sm:$0xff]   ;;  %v936_v58 = vld [vmem:[#allocation5 + $0xa0] ss:$8 sps:$4 sm:$0xff]   ;;  %v938_v60 = vld [vmem:[#allocation5 + $0x94] ss:$8 sps:$4 sm:$0xff]  }
  0x3a   :  { %516 = vmatprep.subr.bf16.mxu1 %v886_v21  ;;  %497 = vmatprep.mubr.bf16.mxu0 %v66_v49  ;;  %v937_v59 = vld [vmem:[#allocation5 + $0x1a0] ss:$8 sps:$4 sm:$0xff]   ;;  %v940_v61 = vld [vmem:[#allocation5 + $0x194] ss:$8 sps:$4 sm:$0xff]   ;;  %v942_v62 = vld [vmem:[#allocation5 + $0x90] ss:$8 sps:$4 sm:$0xff]  }
  0x3b   :  { %538 = vmatprep.mubr.bf16.mxu1 %v68_v52  ;;  %v943_v63 = vld [vmem:[#allocation5 + $0x190] ss:$8 sps:$4 sm:$0xff]   ;;  %v944_v0 = vld [vmem:[#allocation5 + $0x84] ss:$8 sps:$4 sm:$0xff]   ;;  %v948_v2 = vld [vmem:[#allocation5 + $0x80] ss:$8 sps:$4 sm:$0xff]  }
  0x3c   :  { %476 = vmatpush1.bf16.msra.mxu0 %v888_v22  ;;  %v946_v1 = vld [vmem:[#allocation5 + $0x184] ss:$8 sps:$4 sm:$0xff]   ;;  %v949_v3 = vld [vmem:[#allocation5 + $0x180] ss:$8 sps:$4 sm:$0xff]   ;;  %v63_v5 = vld [vmem:[#allocation2 + $0x10] sm:$0xff]  ;;  %s733_s13 = sshll.u32 %s1059_s12, 4  ;;  %s734_s13 = int_to_ptr.vmem [resolvable:$true] %s733_s13 }
  0x3d   :  { %517 = vmatpush1.bf16.msra.mxu1 %v889_v23  ;;  %477 = vmatprep.subr.bf16.mxu0 %v890_v24  ;;  %v950_v6 = vld [vmem:[#allocation7 + $0x78] sm:$0xff]   ;;  %v67_v8 = vpack.c.bf16 %v63_v5, %v63_v5  ;;  %v952_v10 = vld [vmem:[#allocation7 + $0x70] sm:$0xff]   ;;  %v954_v12 = vld [vmem:[#allocation7 + $0x68] sm:$0xff]   ;;  %v135_v24 = vlaneseq  ;;  %s1026_s14 = scalar_lea.vmem %s734_s13, 128  ;;  %p1031_p2 = scmp.lt.s32.totalorder %s734_s13, %s734_s13 }
  0x3e   :  { %518 = vmatprep.subr.bf16.mxu1 %v892_v25  ;;  %v951_v9 = vld [vmem:[#allocation7 + $0x38] sm:$0xff]   ;;  %v953_v11 = vld [vmem:[#allocation7 + $0x30] sm:$0xff]   ;;  %v955_v13 = vld [vmem:[#allocation7 + $0x28] sm:$0xff]   ;;  %p1027_p1 = scmp.ne.s32.totalorder %s734_s13, %s1026_s14  ;;  %p1032_p3 = scmp.lt.s32.totalorder %s1026_s14, %s1026_s14 }
  0x3f   :  { %v956_v14 = vld [vmem:[#allocation7 + $0x60] sm:$0xff]   ;;  %v958_v16 = vld [vmem:[#allocation7 + $0x58] sm:$0xff]   ;;  %v960_v18 = vld [vmem:[#allocation7 + $0x50] sm:$0xff]   ;;  %v136_v25 = vshrl.u32 %v135_v24, 7 }
  0x40   :  { %478 = vmatpush1.bf16.msra.mxu0 %v894_v26  ;;  %v957_v15 = vld [vmem:[#allocation7 + $0x20] sm:$0xff]   ;;  %v959_v17 = vld [vmem:[#allocation7 + $0x18] sm:$0xff]   ;;  %v961_v19 = vld [vmem:[#allocation7 + $0x10] sm:$0xff]   ;;  %p1033_p4 = por %p1032_p3, %p1031_p2 }
  0x41   :  { %519 = vmatpush1.bf16.msra.mxu1 %v895_v27  ;;  %479 = vmatprep.subr.bf16.mxu0 %v896_v28  ;;  %v962_v20 = vld [vmem:[#allocation7 + $0x48] sm:$0xff]   ;;  %v964_v22 = vld [vmem:[#allocation7 + $0x40] sm:$0xff]   ;;  %v137_v26 = vsub.s32 0, %v136_v25  ;;  %v141_v28 = vsub.s32 1, %v136_v25 }
  0x42   :  { %520 = vmatprep.subr.bf16.mxu1 %v898_v29  ;;  %v963_v21 = vld [vmem:[#allocation7 + $0x8] sm:$0xff]   ;;  %v965_v23 = vld [vmem:[#allocation7] sm:$0xff]   ;;  %p1034_p5 = pnand %p1033_p4, %p1027_p1 }
  0x43   :  { %v133_v27 = vld [vmem:[%s1110_s2] sm:$0x3] }
  0x44   :  { %480 = vmatpush1.bf16.msra.mxu0 %v900_v30  ;;  %v138_v29 = vrot.slane %v133_v27, %v137_v26  ;;  %v142_v30 = vrot.slane %v133_v27, %v141_v28 }
  0x45   :  { %521 = vmatpush1.bf16.msra.mxu1 %v901_v31  ;;  %481 = vmatprep.subr.bf16.mxu0 %v902_v32 }
  0x46   :  { %522 = vmatprep.subr.bf16.mxu1 %v904_v33 }
  0x48   :  { %482 = vmatpush2.bf16.msra.mxu0 %v906_v34 }
  0x49   :  { %523 = vmatpush2.bf16.msra.mxu1 %v907_v35  ;;  %483 = vmatprep.subr.bf16.mxu0 %v908_v36 }
  0x4a   :  { %524 = vmatprep.subr.bf16.mxu1 %v910_v37 }
  0x4c   :  { %484 = vmatpush2.bf16.msra.mxu0 %v912_v38 }
  0x4d   :  { %525 = vmatpush2.bf16.msra.mxu1 %v913_v39  ;;  %485 = vmatprep.subr.bf16.mxu0 %v914_v40 }
  0x4e   :  { %526 = vmatprep.subr.bf16.mxu1 %v916_v41 }
  0x50   :  { %486 = vmatpush2.bf16.msra.mxu0 %v918_v42 }
  0x51   :  { %527 = vmatpush2.bf16.msra.mxu1 %v919_v43  ;;  %487 = vmatprep.subr.bf16.mxu0 %v920_v44 }
  0x52   :  { %528 = vmatprep.subr.bf16.mxu1 %v922_v45 }
  0x54   :  { %488 = vmatpush2.bf16.msra.mxu0 %v924_v47 }
  0x55   :  { %529 = vmatpush2.bf16.msra.mxu1 %v925_v48  ;;  %489 = vmatprep.subr.bf16.mxu0 %v926_v51  ;;  %v807_v48 = vld [vmem:[%s1112_s4] ss:$0 sm:$0xff] }
  0x56   :  { %530 = vmatprep.subr.bf16.mxu1 %v928_v53 }
  0x58   :  { %490 = vmatpush2.bf16.msra.mxu0 %v930_v54 }
  0x59   :  { %531 = vmatpush2.bf16.msra.mxu1 %v931_v55  ;;  %491 = vmatprep.subr.bf16.mxu0 %v932_v56 }
  0x5a   :  { %532 = vmatprep.subr.bf16.mxu1 %v934_v57 }
  0x5c   :  { %492 = vmatpush2.bf16.msra.mxu0 %v936_v58 }
  0x5d   :  { %533 = vmatpush2.bf16.msra.mxu1 %v937_v59  ;;  %493 = vmatprep.subr.bf16.mxu0 %v938_v60 }
  0x5e   :  { %534 = vmatprep.subr.bf16.mxu1 %v940_v61 }
  0x60   :  { %494 = vmatpush2.bf16.msra.mxu0 %v942_v62 }
  0x61   :  { %535 = vmatpush2.bf16.msra.mxu1 %v943_v63  ;;  %495 = vmatprep.subr.bf16.mxu0 %v944_v0 }
  0x62   :  { %536 = vmatprep.subr.bf16.mxu1 %v946_v1 }
  0x64   :  { %496 = vmatpush2.bf16.msra.mxu0 %v948_v2 }
  0x65   :  { %537 = vmatpush2.bf16.msra.mxu1 %v949_v3  ;;  %824 = vmatprep.subr.bf16.mxu0 %v950_v6 }
  0x67   :  { %498 = vmatmul.mubr.bf16.vlgmr.msra.gmra.mxu0 %v65_v7 }
  0x68   :  { %539 = vmatmul.mubr.bf16.vlgmr.msra.gmra.mxu1 %v67_v8  ;;  %825 = vmatpush3.bf16.msra.mxu0 %v951_v9 }
  0x69   :  { %826 = vmatprep.subr.bf16.mxu0 %v952_v10 }
  0x6c   :  { %827 = vmatpush3.bf16.msra.mxu0 %v953_v11 }
  0x6d   :  { %828 = vmatprep.subr.bf16.mxu0 %v954_v12 }
  0x70   :  { %829 = vmatpush3.bf16.msra.mxu0 %v955_v13 }
  0x71   :  { %830 = vmatprep.subr.bf16.mxu0 %v956_v14 }
  0x74   :  { %831 = vmatpush3.bf16.msra.mxu0 %v957_v15 }
  0x75   :  { %832 = vmatprep.subr.bf16.mxu0 %v958_v16 }
  0x78   :  { %833 = vmatpush3.bf16.msra.mxu0 %v959_v17 }
  0x79   :  { %834 = vmatprep.subr.bf16.mxu0 %v960_v18 }
  0x7c   :  { %835 = vmatpush3.bf16.msra.mxu0 %v961_v19 }
  0x7d   :  { %836 = vmatprep.subr.bf16.mxu0 %v962_v20 }
  0x80   :  { %837 = vmatpush3.bf16.msra.mxu0 %v963_v21 }
  0x81   :  { %838 = vmatprep.subr.bf16.mxu0 %v964_v22 }
  0x84   :  { %839 = vmatpush3.bf16.msra.mxu0 %v965_v23 }
 0x127   :  { %v499_v31 = vpop.f32.mrf.mxu0 }
 0x128   :  { %v540_v32 = vpop.f32.mrf.mxu1  ;;  %v500_v33 = vadd.f32 %v499_v31, %v138_v29 }
 0x129   :  { %v501_v34 = vpop.f32.mrf.mxu0 }
 0x12a   :  { %v542_v35 = vpop.f32.mrf.mxu1  ;;  %v541_v36 = vadd.f32 %v540_v32, %v500_v33  ;;  %v502_v37 = vadd.f32 %v501_v34, %v142_v30 }
 0x12b   :  { %v503_v38 = vpop.f32.mrf.mxu0 }
 0x12c   :  { %v544_v39 = vpop.f32.mrf.mxu1  ;;  %v543_v40 = vadd.f32 %v542_v35, %v502_v37  ;;  %v547_v41 = vmax.f32 %v541_v36, 0.0 }
 0x12d   :  { %v504_v42 = vpop.f32.mrf.mxu0 }
 0x12e   :  { %v545_v43 = vpop.f32.mrf.mxu1  ;;  %v548_v44 = vmax.f32 %v543_v40, 0.0  ;;  %v549_v46 = vpack.c.bf16 %v547_v41, %v547_v41 }
 0x130   :  { %v550_v45 = vpack.c.bf16 %v548_v44, %v548_v44 }
 0x132   :  { %718 = vmatprep.mubr.bf16.mxu0 %v550_v45 }
 0x133   :  { %719 = vmatmul.mubr.bf16.vlgmr.msra.gmra.mxu0 %v549_v46 }
 0x1f3   :  { %v840_v47 = vpop.f32.mrf.mxu0 }
 0x1f5   :  { %v841_v49 = vpop.f32.mrf.mxu0 }
 0x1f6   :  { %v842_v50 = vadd.f32 %v841_v49, %v840_v47 }
 0x1f7   :  { %v843_v51 = vpop.f32.mrf.mxu0 }
 0x1f8   :  { %v721_v52 = vadd.f32 %v842_v50, %v807_v48 }
 0x1f9   :  { %v844_v53 = vpop.f32.mrf.mxu0 }
 0x1fa   :  { %726 = vst [vmem:[#allocation8] sm:$0xff] %v721_v52 }
 0x1fb   :  { %1037 = shalt.err (!%p1034_p5)
}
 0x1fc   :  { %736 = dma.vmem_to_hbm [thread:$0]  %s734_s13, 128, %s1113_s5, [#allocation4]  }
 0x1fd   :  { %1050 = dma.done.wait [#allocation4], 128  }
 0x1fe   :  { %1051 = vsyncadd [#allocation4], 4294967168 }
 0x1ff   :  { %740 = vsyncpa [#allocation3], 1 }
 0x200   :  { %741 = vsyncpa [#allocation6], 1 }
 0x201   :  { %742 = vsyncpa [#allocation4], 1 }

</bundles_post_ra>
